<compile_context>
chip_gen: v5e
topology: v5e:2x2
jax: 0.10.0
libtpu: 0.0.40
codegen_flags: <defaults>
</compile_context>

<pallas_src>
import functools

import jax
import jax.numpy as jnp
from jax.experimental import pallas as pl
from jax.experimental.pallas import tpu as pltpu


def _elemwise_kernel(x_ref, o_ref):
    # ((x + 2) * (x - 3)) / (x + 1)^2, computed in f32 regardless of I/O dtype.
    x = x_ref[...].astype(jnp.float32)
    xp1 = x + 1.0
    num = (x + 2.0) * (x - 3.0)
    den = xp1 * xp1
    # Precise reciprocal keeps the inf behaviour at x == -1 and the 1e-6
    # tolerance while taking the divide off the VALU-critical path.
    # TODO(synk): on v7x with bf16 I/O, consider pl.reciprocal(approx=True) +
    # one Newton step if the exact x == -1 -> inf semantics can be relaxed
    # (the approx path turns it into NaN).
    o_ref[...] = (num * pl.reciprocal(den, approx=False)).astype(o_ref.dtype)


_LANE_CANDIDATES = (8192, 4096, 2048, 1024, 512, 256, 128)
_1D_GRANULE = 8 * 128  # one (8, 128) tile worth of elements


def _sublane(itemsize):
    # f32 -> 8, bf16/f16 -> 16, int8/fp8 -> 32 sublane packing granularity.
    return max(8, 32 // itemsize)


def _round_up(v, m):
    return -(-v // m) * m


@functools.lru_cache(maxsize=None)
def _block_config():
    """Pick (block_bytes, vmem_limit_bytes) from the chip's VMEM capacity."""
    try:
        vmem_cap = int(pltpu.get_tpu_info().vmem_capacity_bytes)
    except Exception:
        vmem_cap = 64 * 1024 * 1024  # conservative: assume v7x-sized VMEM
    if vmem_cap >= 96 * 1024 * 1024:      # v5e / v6e: 128 MiB physical VMEM
        block_bytes = 8 * 1024 * 1024
    else:                                 # v7x: 64 MiB per TensorCore
        block_bytes = 4 * 1024 * 1024
    # in + out, double-buffered, plus headroom for Mosaic-internal scratch.
    vmem_limit = 4 * block_bytes + 8 * 1024 * 1024
    vmem_limit = min(vmem_limit,
                     max(vmem_cap - 16 * 1024 * 1024, 24 * 1024 * 1024))
    return block_bytes, vmem_limit


def _layout_2d(n, itemsize, block_bytes):
    """Return (rows, lane, tile_rows) for n % 128 == 0; None otherwise."""
    if n % 128 != 0:
        return None
    sub = _sublane(itemsize)
    # Prefer the widest lane whose row count is sublane-aligned: keeps stores
    # as long unmasked vst streams (biggest measured store-path lever).
    lane = next((l for l in _LANE_CANDIDATES
                 if n % l == 0 and (n // l) % sub == 0), None)
    if lane is None:
        lane = next(l for l in _LANE_CANDIDATES if n % l == 0)
    rows = n // lane
    if rows <= sub:
        return rows, lane, rows            # single full-extent block (legal)
    target = max(sub, (block_bytes // (lane * itemsize)) // sub * sub)
    if target >= rows:
        tile_rows = rows                   # whole array fits in one block
    else:
        tile_rows = target
        # Keep the step count even when cheap so both v7x TensorCores stay fed.
        steps = -(-rows // tile_rows)
        if steps % 2 == 1:
            alt = _round_up(-(-rows // (steps + 1)), sub)
            if sub <= alt < rows and (-(-rows // alt)) % 2 == 0:
                tile_rows = alt
    return rows, lane, tile_rows


def _layout_1d(n, itemsize, block_bytes):
    """Block length for the irregular (n % 128 != 0) flat path."""
    if n <= _1D_GRANULE:
        return n                           # single full-extent block
    target = max(_1D_GRANULE,
                 (block_bytes // itemsize) // _1D_GRANULE * _1D_GRANULE)
    return min(target, (n // _1D_GRANULE) * _1D_GRANULE)


def _run_2d(x2d, tile_rows, lane, vmem_limit):
    rows = x2d.shape[0]
    grid = (pl.cdiv(rows, tile_rows),)     # final block may be partial; Pallas
                                           # masks its writeback (no pad/slice)
    return pl.pallas_call(
        _elemwise_kernel,
        out_shape=jax.ShapeDtypeStruct((rows, lane), x2d.dtype),
        grid_spec=pltpu.PrefetchScalarGridSpec(
            num_scalar_prefetch=0,
            grid=grid,
            in_specs=[pl.BlockSpec((tile_rows, lane), lambda i: (i, 0))],
            out_specs=pl.BlockSpec((tile_rows, lane), lambda i: (i, 0)),
        ),
        compiler_params=pltpu.CompilerParams(
            dimension_semantics=("parallel",),
            vmem_limit_bytes=vmem_limit,
        ),
    )(x2d)


def _run_1d(x1d, block, vmem_limit):
    n = x1d.shape[0]
    return pl.pallas_call(
        _elemwise_kernel,
        out_shape=jax.ShapeDtypeStruct((n,), x1d.dtype),
        grid_spec=pltpu.PrefetchScalarGridSpec(
            num_scalar_prefetch=0,
            grid=(pl.cdiv(n, block),),
            in_specs=[pl.BlockSpec((block,), lambda i: (i,))],
            out_specs=pl.BlockSpec((block,), lambda i: (i,)),
        ),
        compiler_params=pltpu.CompilerParams(
            dimension_semantics=("parallel",),
            vmem_limit_bytes=vmem_limit,
        ),
    )(x1d)


def pt_module_forward(x):
    """Compute ((x+2)*(x-3)) / (x+1)^2 elementwise via a Pallas TPU kernel."""
    orig_shape = x.shape
    n = x.size
    if n == 0:
        return x
    itemsize = jnp.dtype(x.dtype).itemsize
    block_bytes, vmem_limit = _block_config()

    layout = _layout_2d(n, itemsize, block_bytes)
    if layout is not None:
        # Fast path: exact 2D factorization, lane- and sublane-dense blocks,
        # no pad / no slice -> zero extra HBM copies around the kernel.
        rows, lane, tile_rows = layout
        out2d = _run_2d(x.reshape(rows, lane), tile_rows, lane, vmem_limit)
        return out2d.reshape(orig_shape)

    # Irregular (n % 128 != 0) path: flat 1D view; the (possibly partial) last
    # block is masked by Pallas on writeback, so HBM traffic stays at the
    # 2N-byte minimum (no jnp.pad + trailing slice round trips).
    # TODO(synk): a manual-DMA 2D kernel with an in-kernel masked tail store
    # could recover the lane-dense 2D layout for these sizes as well.
    block = _layout_1d(n, itemsize, block_bytes)
    out1d = _run_1d(x.reshape(-1), block, vmem_limit)
    return out1d.reshape(orig_shape)


if __name__ == "__main__":
    key = jax.random.PRNGKey(0)
    # Small NCHW-shaped input consistent with the module's elementwise forward.
    x = jax.random.normal(key, (2, 4, 16, 16), dtype=jnp.float32)

    out = jax.block_until_ready(pt_module_forward(x))

    # Reference check in plain JAX (same semantics as the PyTorch forward).
    ref = ((x + 2.0) * (x - 3.0)) / jnp.power(x + 1.0, 2)
    assert out.shape == x.shape and out.dtype == x.dtype
    assert jnp.allclose(out, ref, rtol=1e-6, atol=1e-6), "mismatch vs reference"

    print("KERNEL_OK")
</pallas_src>

<mosaic_0001>
module attributes {stable_mosaic.version = 11 : i64} {
  func.func @_elemwise_kernel(%arg0: i32, %arg1: memref<8x256xf32, #tpu.memory_space<vmem>>, %arg2: memref<8x256xf32, #tpu.memory_space<vmem>>) attributes {dimension_semantics = [#tpu.dimension_semantics<parallel>], iteration_bounds = array<i64: 1>, scalar_prefetch = 0 : i64, scratch_operands = 0 : i64, tpu.core_type = #tpu.core_type<tc>, window_params = [{transform_indices = @transform_0, window_bounds = array<i64: 8, 256>}, {transform_indices = @transform_1, window_bounds = array<i64: 8, 256>}]} {
    %c0 = arith.constant 0 : index
    %c0_0 = arith.constant 0 : index
    %0 = vector.load %arg1[%c0, %c0_0] : memref<8x256xf32, #tpu.memory_space<vmem>>, vector<8x256xf32>
    %cst = arith.constant 1.000000e+00 : f32
    %1 = vector.broadcast %cst : f32 to vector<8x256xf32>
    %2 = arith.addf %0, %1 : vector<8x256xf32>
    %cst_1 = arith.constant 2.000000e+00 : f32
    %3 = vector.broadcast %cst_1 : f32 to vector<8x256xf32>
    %4 = arith.addf %0, %3 : vector<8x256xf32>
    %cst_2 = arith.constant 3.000000e+00 : f32
    %5 = vector.broadcast %cst_2 : f32 to vector<8x256xf32>
    %6 = arith.subf %0, %5 : vector<8x256xf32>
    %7 = arith.mulf %4, %6 : vector<8x256xf32>
    %8 = arith.mulf %2, %2 : vector<8x256xf32>
    %9 = tpu.reciprocal %8 : vector<8x256xf32> -> vector<8x256xf32>
    %10 = arith.mulf %7, %9 : vector<8x256xf32>
    %c0_3 = arith.constant 0 : index
    %c0_4 = arith.constant 0 : index
    %11 = vector.load %arg2[%c0_3, %c0_4] : memref<8x256xf32, #tpu.memory_space<vmem>>, vector<8x256xf32>
    tpu.vector_store %arg2[%c0_3, %c0_4], %10 {strides = array<i32>} : memref<8x256xf32, #tpu.memory_space<vmem>>, vector<8x256xf32>,
    return
  }
  func.func @transform_0(%arg0: i32) -> (i32, i32) {
    %c0_i32 = arith.constant 0 : i32
    %c0_i32_0 = arith.constant 0 : i32
    return %arg0, %c0_i32 : i32, i32
  }
  func.func @transform_1(%arg0: i32) -> (i32, i32) {
    %c0_i32 = arith.constant 0 : i32
    %c0_i32_0 = arith.constant 0 : i32
    return %arg0, %c0_i32 : i32, i32
  }
}

</mosaic_0001>

<bundles_post_ra>
// kernel: tpu_custom_call.1
= control target key start
LH: loop header
LB: loop body
LE: loop exit
PB: predicated region body
PF: predicated region fallthrough
CT: control target
= control target key end

     0   :  { %6 = vsyncpa [#allocation3], 0  ;;  %s168_s0 = inlined_call_operand.hbm [shape: f32[8,256], index: 0, kind: input, shape index: {}]   ;;  %s169_s1 = inlined_call_operand.hbm [shape: f32[8,256], index: 1, kind: output, shape index: {}]  }
   0x1   :  { %7 = vsyncpa [#allocation4], 0  ;;  %s13_s8 = sshll.u32 %s168_s0, 4  ;;  %s144_s9 = smov [#allocation2]   ;;  %s14_s8 = int_to_ptr.hbm [resolvable:$true] %s13_s8 }
   0x2   :  { %s15_s10 = sshll.u32 %s144_s9, 4  ;;  %s16_s10 = int_to_ptr.vmem [resolvable:$true] %s15_s10 }
   0x3   :  { %18 = dma.hbm_to_vmem [thread:$0]  %s14_s8, 256, %s16_s10, [#allocation3]  }
   0x4   :  { %140 = dma.done.wait [#allocation3], 256  }
   0x5   :  { %141 = vsyncadd [#allocation3], 4294967040  ;;  %v23_v0 = vld [vmem:[#allocation2] sm:$0xff]  ;;  %v24_v1 = vld [vmem:[#allocation2 + $0x8] sm:$0xff]  ;;  %s145_s0 = smov [#allocation5]   ;;  %s74_s14 = sshll.u32 %s169_s1, 4  ;;  %s75_s14 = int_to_ptr.hbm [resolvable:$true] %s74_s14 }
   0x6   :  { %v25_v2 = vadd.f32 1.0, %v23_v0  ;;  %v26_v3 = vadd.f32 1.0, %v24_v1  ;;  %v27_v8 = vadd.f32 2.0, %v23_v0  ;;  %v84_v9 = vadd.f32 -3.0, %v23_v0  ;;  %s72_s11 = sshll.u32 %s145_s0, 4  ;;  %s73_s11 = int_to_ptr.vmem [resolvable:$true] %s72_s11 }
   0x7   :  { %v28_v11 = vadd.f32 2.0, %v24_v1  ;;  %v85_v13 = vadd.f32 -3.0, %v24_v1 }
   0x8   :  { %v33_v4 = vmul.f32 %v25_v2, %v25_v2  ;;  %v34_v5 = vmul.f32 %v26_v3, %v26_v3  ;;  %v31_v24 = vmul.f32 %v84_v9, %v27_v8 }
   0x9   :  { %v32_v27 = vmul.f32 %v85_v13, %v28_v11 }
   0xa   :  { %88 = vrcp.f32 %v33_v4  ;;  %vm40_vm0 = vweird.f32 %v33_v4  ;;  %v46_v12 = vand.u32 2147483648, %v33_v4  ;;  %v44_v16 = vand.u32 2147483647, %v33_v4 }
   0xb   :  { %90 = vrcp.f32 %v34_v5  ;;  %v60_v17 = vand.u32 2147483648, %v34_v5  ;;  %vm54_vm2 = vweird.f32 %v34_v5  ;;  %v58_v19 = vand.u32 2147483647, %v34_v5 }
   0xc   :  { %v47_v22 = vor.u32 1.1754944e-38, %v46_v12  ;;  %vm45_vm5 = vcmp.eq.f32.partialorder %v44_v16, 8.507059e+37 }
   0xd   :  { %v61_v26 = vor.u32 1.1754944e-38, %v60_v17  ;;  %vm59_vm7 = vcmp.eq.f32.partialorder %v58_v19, 8.507059e+37 }
  0x10   :  { %v89_v6 = vpop.eup %88 }
  0x11   :  { %v91_v7 = vpop.eup %90  ;;  %v36_v10 = vmul.f32 %v89_v6, %v33_v4  ;;  %vm41_vm1 = vweird.f32 %v89_v6 }
  0x12   :  { %v50_v14 = vmul.f32 %v91_v7, %v34_v5  ;;  %vm55_vm3 = vweird.f32 %v91_v7  ;;  %vm159_vm4 = vmor %vm40_vm0, %vm41_vm1 }
  0x13   :  { %v37_v15 = vsub.f32 1.0, %v36_v10  ;;  %vm56_vm6 = vmor %vm54_vm2, %vm55_vm3 }
  0x14   :  { %v51_v18 = vsub.f32 1.0, %v50_v14 }
  0x15   :  { %v38_v20 = vmul.f32 %v89_v6, %v37_v15 }
  0x16   :  { %v52_v23 = vmul.f32 %v91_v7, %v51_v18 }
  0x17   :  { %v39_v25 = vadd.f32 %v89_v6, %v38_v20 }
  0x18   :  { %v53_v28 = vadd.f32 %v91_v7, %v52_v23 }
  0x19   :  { %v43_v29 = vsel %vm159_vm4, %v89_v6, %v39_v25 }
  0x1a   :  { %v48_v30 = vsel %vm45_vm5, %v47_v22, %v43_v29  ;;  %v57_v31 = vsel %vm56_vm6, %v91_v7, %v53_v28 }
  0x1b   :  { %v63_v32 = vmul.f32 %v48_v30, %v31_v24  ;;  %v62_v33 = vsel %vm59_vm7, %v61_v26, %v57_v31 }
  0x1c   :  { %v64_v34 = vmul.f32 %v62_v33, %v32_v27 }
  0x1d   :  { %65 = vst [vmem:[#allocation5] sm:$0xff] %v63_v32 }
  0x1e   :  { %66 = vst [vmem:[#allocation5 + $0x8] sm:$0xff] %v64_v34 }
  0x1f   :  { %77 = dma.vmem_to_hbm [thread:$0]  %s73_s11, 256, %s75_s14, [#allocation4]  }
  0x20   :  { %142 = dma.done.wait [#allocation4], 256  }
  0x21   :  { %143 = vsyncadd [#allocation4], 4294967040 }
  0x22   :  { %82 = vsyncpa [#allocation3], 1 }
  0x23   :  { %83 = vsyncpa [#allocation4], 1 }

</bundles_post_ra>
